<compile_context>
chip_gen: v5e
topology: v5e:2x2
jax: 0.10.0
libtpu: 0.0.40
codegen_flags: <defaults>
</compile_context>

<pallas_src>
import functools
import numpy as np
import jax
import jax.numpy as jnp
from jax.experimental import pallas as pl
from jax.experimental.pallas import tpu as pltpu


# ------------------------------------------------------------------ kernel --

def _rope_riflex_kernel(ids_ref, table_ref, phase_ref, out_ref, *, n_axes):
    """ids_ref:   [tile_m, n_axes]  int32 (or float) position ids
       table_ref: [n_axes, 4*d_half] f32  masked & 4x-replicated omega
       phase_ref: [1, 4*d_half]      f32  per-column phase (pi/2, pi, 0, pi/2)
       out_ref:   [tile_m, 4*d_half] f32  flattened [..., d_half, 2, 2] slab
    """
    ids = ids_ref[...].astype(jnp.float32)            # int->f32 on VPU, free
    tab = table_ref[...]                               # VMEM-resident, tiny
    # angles in output layout: ang[m, 4j+p] = ids[m, axis(j)]*omega[j] + phase[p]
    # Exact-f32 broadcast-accumulate over the (3-long) static axis loop.
    ang = phase_ref[...] + ids[:, 0:1] * tab[0:1, :]
    for a in range(1, n_axes):
        ang = ang + ids[:, a:a + 1] * tab[a:a + 1, :]
    # One lane-dense transcendental pass yields cos, -sin, sin, cos columns.
    out_ref[...] = jnp.sin(ang)


# ------------------------------------------------------------ host-side prep --

def _round_up(x, m):
    return ((x + m - 1) // m) * m


def build_tables(axes_dim, theta, num_frames, k):
    """One-time prep.

    Returns:
      table: [n_axes, 4*d_half] f32. table[a, 4*j + p] = omega[j] if column j
             belongs to axis a else 0 (p = 0..3), RifleX override applied on
             the temporal axis (axis 0).
      phase: [1, 4*d_half] f32 with per-column pattern [pi/2, pi, 0, pi/2] so
             sin(angle + phase) = (cos, -sin, sin, cos).
      d_half: sum(axes_dim) // 2
    """
    segs = []
    for i, dim in enumerate(axes_dim):
        assert dim % 2 == 0
        half = dim // 2
        scale = np.linspace(0.0, (dim - 2) / dim, num=half, dtype=np.float64)
        omega = 1.0 / np.power(float(theta), scale)
        if i == 0 and k is not None and k > 0 and num_frames:   # RifleX (temporal)
            omega[k - 1] = 0.9 * 2.0 * np.pi / num_frames
        segs.append(omega)

    d_half = int(sum(len(s) for s in segs))
    out_w = 4 * d_half
    table = np.zeros((len(axes_dim), out_w), np.float64)
    off = 0
    for a, s in enumerate(segs):
        for p in range(4):
            table[a, 4 * off + p: 4 * (off + len(s)): 4] = s
        off += len(s)
    phase = np.tile(np.array([np.pi / 2.0, np.pi, 0.0, np.pi / 2.0],
                             dtype=np.float64), d_half)[None, :]
    return (jnp.asarray(table, jnp.float32),
            jnp.asarray(phase, jnp.float32),
            d_half)


# --------------------------------------------------------------------- glue --

def embed_nd_riflex_forward(ids, table, phase, d_half, *, tile_m_max=4096):
    """Pallas implementation of EmbedND_RifleX.forward.

    ids: [B, N, n_axes] integer (or float) positions
    returns: [B, 1, N, d_half, 2, 2] float32
    """
    B, N, n_axes = ids.shape
    out_w = 4 * d_half
    M = B * N

    ids2d = ids.reshape(M, n_axes)                    # pure view
    if not jnp.issubdtype(ids2d.dtype, jnp.floating):
        ids2d = ids2d.astype(jnp.int32)               # keep ints; cast in-kernel

    # Row tile: sublane-aligned, large for DMA efficiency, but capped at
    # ceil(M/2) so the parallel grid has >= 2 steps (v7x megacore).
    half_m = -(-M // 2)
    tile_m = max(8, min(tile_m_max, _round_up(half_m, 8)))
    M_pad = _round_up(M, tile_m)
    if M_pad != M:
        ids2d = jnp.pad(ids2d, ((0, M_pad - M), (0, 0)))
    grid = (M_pad // tile_m,)

    # VMEM budget: 2x double-buffered (ids block + out block) + tables + slack.
    step_bytes = tile_m * n_axes * ids2d.dtype.itemsize + tile_m * out_w * 4
    vmem_limit = int(min(max(2 * step_bytes + (n_axes + 1) * out_w * 4
                             + (8 << 20), 16 << 20), 32 << 20))

    out2d = pl.pallas_call(
        functools.partial(_rope_riflex_kernel, n_axes=n_axes),
        grid=grid,
        in_specs=[
            pl.BlockSpec((tile_m, n_axes), lambda i: (i, 0)),
            pl.BlockSpec((n_axes, out_w), lambda i: (0, 0)),   # VMEM-resident
            pl.BlockSpec((1, out_w), lambda i: (0, 0)),        # VMEM-resident
        ],
        out_specs=pl.BlockSpec((tile_m, out_w), lambda i: (i, 0)),
        out_shape=jax.ShapeDtypeStruct((M_pad, out_w), jnp.float32),
        compiler_params=pltpu.CompilerParams(
            dimension_semantics=("parallel",),
            vmem_limit_bytes=vmem_limit),
    )(ids2d, table, phase)

    if M_pad != M:
        out2d = out2d[:M]
    # Row-major [M, 4*d_half] == flattened [B, N, d_half, 2, 2]: pure view.
    return out2d.reshape(B, N, d_half, 2, 2)[:, None]          # unsqueeze(1)


# ---------------------------------------------------------------- reference --

def reference_forward(ids_np, axes_dim, theta, num_frames, k):
    """Pure-numpy re-implementation of the original torch semantics."""
    ids_np = np.asarray(ids_np)
    B, N, n_axes = ids_np.shape
    parts = []
    for i, dim in enumerate(axes_dim):
        half = dim // 2
        scale = np.linspace(0.0, (dim - 2) / dim, num=half, dtype=np.float64)
        omega = 1.0 / np.power(float(theta), scale)
        if i == 0 and k is not None and k > 0 and num_frames:
            omega[k - 1] = 0.9 * 2.0 * np.pi / num_frames
        pos = ids_np[..., i].astype(np.float32).astype(np.float64)
        ang = np.einsum('bn,d->bnd', pos, omega)
        out = np.stack([np.cos(ang), -np.sin(ang), np.sin(ang), np.cos(ang)],
                       axis=-1).reshape(B, N, half, 2, 2)
        parts.append(out.astype(np.float32))
    return np.concatenate(parts, axis=-3)[:, None]   # [B, 1, N, D_half, 2, 2]


# --------------------------------------------------------------------- main --

if __name__ == "__main__":
    def run_case(axes_dim, theta, num_frames, k, B, N, key):
        table, phase, d_half = build_tables(axes_dim, theta, num_frames, k)
        ids = jax.random.randint(key, (B, N, len(axes_dim)), 0, 32,
                                 dtype=jnp.int32)
        out = jax.block_until_ready(
            embed_nd_riflex_forward(ids, table, phase, d_half))
        ref = reference_forward(np.asarray(ids), axes_dim, theta, num_frames, k)
        assert out.shape == ref.shape == (B, 1, N, d_half, 2, 2)
        np.testing.assert_allclose(np.asarray(out), ref, rtol=1e-3, atol=1e-3)

    key = jax.random.PRNGKey(0)
    k1, k2 = jax.random.split(key)
    # Small sanity case: 3 axes (temporal, h, w), d_half = 16.
    run_case((16, 8, 8), 10000.0, 16, 4, 2, 16, k1)
    # WanVideo-style axes_dim (44, 42, 42) -> d_half = 64, lane-dense output.
    run_case((44, 42, 42), 10000.0, 16, 4, 1, 24, k2)

    print("KERNEL_OK")
</pallas_src>

<mosaic_0001>
module attributes {stable_mosaic.version = 11 : i64} {
  func.func @_rope_riflex_kernel(%arg0: i32, %arg1: memref<16x3xi32, #tpu.memory_space<vmem>>, %arg2: memref<3x64xf32, #tpu.memory_space<vmem>>, %arg3: memref<1x64xf32, #tpu.memory_space<vmem>>, %arg4: memref<16x64xf32, #tpu.memory_space<vmem>>) attributes {dimension_semantics = [#tpu.dimension_semantics<parallel>], iteration_bounds = array<i64: 2>, scalar_prefetch = 0 : i64, scratch_operands = 0 : i64, tpu.core_type = #tpu.core_type<tc>, window_params = [{transform_indices = @transform_0, window_bounds = array<i64: 16, 3>}, {pipeline_mode = #tpu.pipeline_mode<synchronous>, transform_indices = @transform_1, window_bounds = array<i64: 3, 64>}, {pipeline_mode = #tpu.pipeline_mode<synchronous>, transform_indices = @transform_2, window_bounds = array<i64: 1, 64>}, {transform_indices = @transform_3, window_bounds = array<i64: 16, 64>}]} {
    %c0 = arith.constant 0 : index
    %c0_0 = arith.constant 0 : index
    %0 = vector.load %arg1[%c0, %c0_0] : memref<16x3xi32, #tpu.memory_space<vmem>>, vector<16x3xi32>
    %1 = arith.sitofp %0 : vector<16x3xi32> to vector<16x3xf32>
    %c0_1 = arith.constant 0 : index
    %c0_2 = arith.constant 0 : index
    %2 = vector.load %arg2[%c0_1, %c0_2] : memref<3x64xf32, #tpu.memory_space<vmem>>, vector<3x64xf32>
    %c0_3 = arith.constant 0 : index
    %c0_4 = arith.constant 0 : index
    %3 = vector.load %arg3[%c0_3, %c0_4] : memref<1x64xf32, #tpu.memory_space<vmem>>, vector<1x64xf32>
    %4 = vector.extract_strided_slice %1 {offsets = [0, 0], sizes = [16, 1], strides = [1, 1]} : vector<16x3xf32> to vector<16x1xf32>
    %5 = vector.extract_strided_slice %2 {offsets = [0, 0], sizes = [1, 64], strides = [1, 1]} : vector<3x64xf32> to vector<1x64xf32>
    %6 = vector.broadcast %4 : vector<16x1xf32> to vector<16x64xf32>
    %7 = vector.broadcast %5 : vector<1x64xf32> to vector<16x64xf32>
    %8 = arith.mulf %6, %7 : vector<16x64xf32>
    %9 = vector.broadcast %3 : vector<1x64xf32> to vector<16x64xf32>
    %10 = arith.addf %9, %8 : vector<16x64xf32>
    %11 = vector.extract_strided_slice %1 {offsets = [0, 1], sizes = [16, 1], strides = [1, 1]} : vector<16x3xf32> to vector<16x1xf32>
    %12 = vector.extract_strided_slice %2 {offsets = [1, 0], sizes = [1, 64], strides = [1, 1]} : vector<3x64xf32> to vector<1x64xf32>
    %13 = vector.broadcast %11 : vector<16x1xf32> to vector<16x64xf32>
    %14 = vector.broadcast %12 : vector<1x64xf32> to vector<16x64xf32>
    %15 = arith.mulf %13, %14 : vector<16x64xf32>
    %16 = arith.addf %10, %15 : vector<16x64xf32>
    %17 = vector.extract_strided_slice %1 {offsets = [0, 2], sizes = [16, 1], strides = [1, 1]} : vector<16x3xf32> to vector<16x1xf32>
    %18 = vector.extract_strided_slice %2 {offsets = [2, 0], sizes = [1, 64], strides = [1, 1]} : vector<3x64xf32> to vector<1x64xf32>
    %19 = vector.broadcast %17 : vector<16x1xf32> to vector<16x64xf32>
    %20 = vector.broadcast %18 : vector<1x64xf32> to vector<16x64xf32>
    %21 = arith.mulf %19, %20 : vector<16x64xf32>
    %22 = arith.addf %16, %21 : vector<16x64xf32>
    %23 = math.sin %22 : vector<16x64xf32>
    %c0_5 = arith.constant 0 : index
    %c0_6 = arith.constant 0 : index
    %24 = vector.load %arg4[%c0_5, %c0_6] : memref<16x64xf32, #tpu.memory_space<vmem>>, vector<16x64xf32>
    tpu.vector_store %arg4[%c0_5, %c0_6], %23 {strides = array<i32>} : memref<16x64xf32, #tpu.memory_space<vmem>>, vector<16x64xf32>,
    return
  }
  func.func @transform_0(%arg0: i32) -> (i32, i32) {
    %c0_i32 = arith.constant 0 : i32
    %c0_i32_0 = arith.constant 0 : i32
    return %arg0, %c0_i32 : i32, i32
  }
  func.func @transform_1(%arg0: i32) -> (i32, i32) {
    %c0_i32 = arith.constant 0 : i32
    %c0_i32_0 = arith.constant 0 : i32
    %c0_i32_1 = arith.constant 0 : i32
    return %c0_i32, %c0_i32_0 : i32, i32
  }
  func.func @transform_2(%arg0: i32) -> (i32, i32) {
    %c0_i32 = arith.constant 0 : i32
    %c0_i32_0 = arith.constant 0 : i32
    %c0_i32_1 = arith.constant 0 : i32
    return %c0_i32, %c0_i32_0 : i32, i32
  }
  func.func @transform_3(%arg0: i32) -> (i32, i32) {
    %c0_i32 = arith.constant 0 : i32
    %c0_i32_0 = arith.constant 0 : i32
    return %arg0, %c0_i32 : i32, i32
  }
}

</mosaic_0001>

<bundles_post_ra>
// kernel: tpu_custom_call.1
= control target key start
LH: loop header
LB: loop body
LE: loop exit
PB: predicated region body
PF: predicated region fallthrough
CT: control target
= control target key end

     0   :  { %8 = vsyncpa [#allocation3], 0  ;;  %s1025_s0 = inlined_call_operand.vmem [shape: s32[32,3], index: 0, kind: input, shape index: {}]   ;;  %s1026_s1 = inlined_call_operand.vmem [shape: f32[3,64], index: 1, kind: input, shape index: {}]   ;;  %s1027_s2 = inlined_call_operand.vmem [shape: f32[1,64], index: 2, kind: input, shape index: {}]   ;;  %s1028_s3 = inlined_call_operand.hbm [shape: f32[32,64], index: 3, kind: output, shape index: {}]  }
   0x1   :  { %10 = vsyncpa [#allocation3 + $0x1], 0  ;;  %s782_s12 = smov 0   ;;  %s784_s13 = smov 0  }
   0x2   :  { %s786_s14 = smov 0   ;;  %s788_s15 = smov 0  }
   0x3 LB: > { %s803_s16 = sadd.s32 4294967295, %s749_s15   ;;  %s613_s17 = sadd.s32 4294967294, %s749_s15   ;;  %s749_s15 = sphi %s788_s15, %s1036_s15   ;;  %s745_s14 = sphi %s786_s14, %s1035_s14   ;;  %s741_s13 = sphi %s784_s13, %s1034_s13   ;;  %s737_s12 = sphi %s782_s12, %s1033_s12  }
   0x4   : > { %s807_s18 = sadd.s32 1, %s749_s15   ;;  %s91_s19 = sadd.s32 1, %s745_s14 }
   0x5   : > { %s88_s20 = ssub.s32 %s749_s15, %s807_s18  ;;  %p101_p0 = scmp.ne.s32.totalorder %s745_s14, %s741_s13 }
   0x6   : > { %p89_p1 = scmp.eq.s32.totalorder %s88_s20, 0  ;;  %p102_p2 = scmp.eq.s32.totalorder %s803_s16, 1 }
   0x7   : > { %p107_p3 = scmp.ne.s32.totalorder %s741_s13, %s737_s12  ;;  %p108_p4 = scmp.eq.s32.totalorder %s613_s17, 1 }
   0x8   : > { %s818_s21 = scalar_select %p89_p1, %s745_s14, %s91_s19  }
   0x9   : > { %p820_p5 = por %p102_p2, %p101_p0  ;;  %p824_p6 = por %p108_p4, %p107_p3 }
   0xa   : > { %p616_p7 = scmp.ge.s32.totalorder %s749_s15, 1  ;;  %p141_p8 = scmp.lt.s32.totalorder %s749_s15, 3 }
   0xc   : > { %p142_p9 = pnand %p616_p7, %p141_p8 }
   0xd   : > { %s618_s24 = sshll.u32 (!%p142_p9), %s803_s16, 1  ;;  %s162_s6 = sand.u32 (!%p142_p9), 1, %s741_s13  }
   0xe   : > { %145 = sbr.rel (%p142_p9) target bundleno = 267 (0x10b), region = 32  ;;  %p166_p10 = scmp.lt.s32.totalorder (!%p142_p9), %s618_s24, 3 }
   0xf   : > { %s617_s7 = sshll.u32 (!%p142_p9), %s162_s6, 4  ;;  %s631_s9 = sshll.u32 (!%p142_p9), %s803_s16, 4 }
  0x10   : > { %s979_s8 = scalar_lea.vmem (!%p142_p9), [#allocation2], %s617_s7  ;;  %s547_s17 = scalar_lea.hbm (!%p142_p9), %s1028_s3, %s631_s9 }
  0x11   : > { %s548_s19 = sshll.u32 (!%p142_p9), %s979_s8, 4  ;;  %s550_s20 = sshll.u32 (!%p142_p9), %s547_s17, 4  ;;  %s549_s19 = int_to_ptr.vmem [resolvable:$true] %s548_s19  ;;  %s551_s20 = int_to_ptr.hbm [resolvable:$true] %s550_s20 }
  0x12   : > { %s536_s16 = scalar_lea.sflag (!%p142_p9), [#allocation3], %s162_s6 }
  0x13   : > { %v751_v0 = vmov 1   ;;  %v752_v1 = vmov 0   ;;  %v753_v2 = vmov 2   ;;  %s1038_s24 = smov (!%p166_p10, %s618_s24), 3  ;;  %v176_v7 = vld [vmem:[%s1026_s1] sm:$0x7] }
  0x14   : > { %683 = vset.pattern.permute.xlu1 %v751_v0  ;;  %682 = vset.pattern.permute.xlu0 %v752_v1  ;;  %s619_s25 = sshll.u32 %s1038_s24, 3  ;;  %v204_v8 = vperm.slane %v176_v7, 1  ;;  %v188_v9 = vperm.slane %v176_v7, 0  ;;  %v217_v10 = vperm.slane %v176_v7, 2  ;;  %v686_v11 = vld [vmem:[%s1027_s2] ss:$0 sm:$0xff] }
  0x15   : > { %684 = vset.pattern.permute.xlu2 %v753_v2  ;;  %s169_s28 = scalar_lea.vmem %s1025_s0, %s619_s25  ;;  %v754_v47 = vmov 683565275   ;;  %v755_v49 = vmov 2475754826   ;;  %v756_v53 = vmov 2131351028  }
  0x16   : > { %v172_v3 = vld [vmem:[%s169_s28] sm:$0xff]  ;;  %v173_v5 = vld [vmem:[%s169_s28 + $0x8] sm:$0xff]  ;;  %v757_v56 = vmov 2102212464   ;;  %v758_v59 = vmov 920167782  }
  0x17   : > { %v174_v4 = vcvt.s32.f32 %v172_v3  ;;  %v175_v6 = vcvt.s32.f32 %v173_v5  ;;  %v759_v62 = vmov 1326507024   ;;  %s701_s24 = sshra.s32 %s551_s20, 4  ;;  %s707_s28 = scalar_lea.hbm %s1028_s3, 32  ;;  %s702_s24 = int_to_ptr.hbm [resolvable:$true] %s701_s24 }
  0x18   : > { %s703_s25 = scalar_lea.hbm %s702_s24, 16  ;;  %p708_p0 = scmp.lt.s32.totalorder %s702_s24, %s1028_s3 }
  0x19   : > { %197 = vperm.xlu1 %683, %v174_v4   ;;  %180 = vperm.xlu0 %682, %v174_v4   ;;  %p704_p11 = scmp.ne.s32.totalorder %s702_s24, %s703_s25  ;;  %p709_p1 = scmp.lt.s32.totalorder %s707_s28, %s703_s25 }
  0x1a   : > { %210 = vperm.xlu2 %684, %v174_v4  }
  0x1b   : > { %p705_p12 = pnand %p704_p11, %p820_p5  ;;  %p710_p2 = por %p709_p1, %p708_p0 }
  0x1d   : > { %p706_p13 = pneg %p705_p12 }
  0x1f   : > { %p711_p3 = pnand %p710_p2, %p706_p13 }
  0x21   : > { %201 = vperm.xlu1 %683, %v175_v6   ;;  %185 = vperm.xlu0 %682, %v175_v6  }
  0x22   : > { %214 = vperm.xlu2 %684, %v175_v6  }
  0x29   : > { %685 = vset.pattern.permute.xlu0 %v753_v2 }
  0x74   : > { %v211_v14 = vpop.permute.xlu2 %210 }
  0x75   : > { %v218_v17 = vmul.f32 %v217_v10, %v211_v14 }
  0x7c   : > { %v215_v28 = vpop.permute.xlu2 %214 }
  0x7d   : > { %v219_v33 = vmul.f32 %v217_v10, %v215_v28 }
  0x8b   : > { %v198_v12 = vpop.permute.xlu1 %197  ;;  %v181_v13 = vpop.permute.xlu0 %180 }
  0x8c   : > { %v205_v15 = vmul.f32 %v204_v8, %v198_v12  ;;  %v189_v16 = vmul.f32 %v188_v9, %v181_v13 }
  0x8e   : > { %v194_v18 = vadd.f32 %v686_v11, %v189_v16 }
  0x90   : > { %v207_v19 = vadd.f32 %v205_v15, %v194_v18 }
  0x92   : > { %v841_v20 = vadd.f32 %v218_v17, %v207_v19 }
  0x93   : > { %v186_v21 = vpop.permute.xlu0 %185  ;;  %v202_v24 = vpop.permute.xlu1 %201 }
  0x94   : > { %v222_v22 = vand.u32 2147483647, %v841_v20  ;;  %v225_v23 = vand.u32 2139095040, %v841_v20  ;;  %v190_v25 = vmul.f32 %v188_v9, %v186_v21  ;;  %v206_v29 = vmul.f32 %v204_v8, %v202_v24 }
  0x96   : > { %v226_v26 = vshrl.u32 %v225_v23, 23  ;;  %v229_v27 = vand.u32 8388607, %v222_v22  ;;  %v195_v30 = vadd.f32 %v686_v11, %v190_v25 }
  0x98   : > { %v620_v31 = vadd.s32 4294967169, %v226_v26  ;;  %v230_v32 = vor.u32 8388608, %v229_v27  ;;  %v208_v34 = vadd.f32 %v206_v29, %v195_v30 }
  0x9a   : > { %v232_v35 = vadd.s32 1, %v620_v31  ;;  %v847_v36 = vadd.f32 %v219_v33, %v208_v34  ;;  %v849_v37 = vshll.u32 %v230_v32, 8 }
  0x9c   : > { %vm233_vm0 = vcmp.gt.s32.totalorder %v232_v35, 0  ;;  %v377_v39 = vand.u32 2147483647, %v847_v36  ;;  %v380_v40 = vand.u32 2139095040, %v847_v36  ;;  %v271_v43 = vand.u32 65535, %v849_v37 }
  0x9d   : > { %v234_v38 = vsel %vm233_vm0, %v232_v35, 0  ;;  %v272_v44 = vshrl.u32 %v849_v37, 16 }
  0x9e   : > { %v236_v41 = vand.u32 31, %v234_v38  ;;  %v381_v45 = vshrl.u32 %v380_v40, 23  ;;  %v235_v46 = vshrl.u32 %v234_v38, 5  ;;  %v859_v51 = vand.u32 8388607, %v377_v39 }
  0xa0   : > { %v237_v42 = vsub.s32 32, %v236_v41  ;;  %v239_v48 = vshll.u32 %v754_v47, %v236_v41  ;;  %v242_v50 = vshll.u32 %v755_v49, %v236_v41  ;;  %v245_v55 = vshll.u32 %v756_v53, %v236_v41 }
  0xa1   : > { %v248_v58 = vshll.u32 %v757_v56, %v236_v41  ;;  %v251_v61 = vshll.u32 %v758_v59, %v236_v41  ;;  %v623_v4 = vadd.s32 4294967169, %v381_v45  ;;  %vm254_vm1 = vcmp.lt.s32.totalorder %v235_v46, 1 }
  0xa2   : > { %v240_v52 = vshrl.u32 %v755_v49, %v237_v42  ;;  %v243_v54 = vshrl.u32 %v756_v53, %v237_v42  ;;  %v246_v57 = vshrl.u32 %v757_v56, %v237_v42  ;;  %v249_v60 = vshrl.u32 %v758_v59, %v237_v42 }
  0xa3   : > { %v252_v63 = vshrl.u32 %v759_v62, %v237_v42  ;;  %vm257_vm2 = vcmp.lt.s32.totalorder %v235_v46, 4  ;;  %v238_v7 = vshrl.u32 %v754_v47, %v237_v42  ;;  %vm256_vm3 = vcmp.lt.s32.totalorder %v235_v46, 3 }
  0xa4   : > { %v241_v0 = vor.u32 %v240_v52, %v239_v48  ;;  %v244_v2 = vor.u32 %v243_v54, %v242_v50  ;;  %v247_v3 = vor.u32 %v246_v57, %v245_v55  ;;  %v250_v5 = vor.u32 %v249_v60, %v248_v58 }
  0xa5   : > { %v253_v6 = vor.u32 %v252_v63, %v251_v61  ;;  %v387_v13 = vadd.s32 1, %v623_v4  ;;  %vm255_vm4 = vcmp.lt.s32.totalorder %v235_v46, 2  ;;  %v385_v26 = vor.u32 8388608, %v859_v51 }
  0xa6   : > { %v259_v8 = vsel %vm257_vm2, %v247_v3, 2102212464  ;;  %v262_v9 = vsel %vm254_vm1, %v241_v0, %v244_v2  ;;  %v266_v10 = vsel %vm254_vm1, %v244_v2, %v247_v3  ;;  %v263_v11 = vsel %vm257_vm2, %v250_v5, 920167782 }
  0xa7   : > { %v267_v12 = vsel %vm257_vm2, %v253_v6, 1326507024  ;;  %v258_v14 = vsel %vm254_vm1, %v238_v7, %v241_v0  ;;  %v264_v15 = vsel %vm256_vm3, %v247_v3, %v263_v11  ;;  %v260_v17 = vsel %vm256_vm3, %v244_v2, %v259_v8 }
  0xa8   : > { %v268_v16 = vsel %vm256_vm3, %v250_v5, %v267_v12  ;;  %v265_v18 = vsel %vm255_vm4, %v262_v9, %v264_v15  ;;  %vm388_vm5 = vcmp.gt.s32.totalorder %v387_v13, 0  ;;  %v871_v27 = vsel %vm255_vm4, %v258_v14, %v260_v17 }
  0xa9   : > { %v269_v19 = vsel %vm255_vm4, %v266_v10, %v268_v16  ;;  %v295_v24 = vand.u32 65535, %v265_v18  ;;  %v296_v25 = vshrl.u32 %v265_v18, 16  ;;  %v389_v30 = vsel %vm388_vm5, %v387_v13, 0 }
  0xaa   : > { %v273_v21 = vand.u32 65535, %v269_v19  ;;  %v274_v23 = vshrl.u32 %v269_v19, 16  ;;  %v391_v52 = vand.u32 31, %v389_v30  ;;  %v878_v63 = vshrl.u32 %v389_v30, 5 }
  0xab   : > { %v298_v33 = vmul.u32 %v296_v25, %v271_v43  ;;  %v299_v34 = vmul.u32 %v295_v24, %v272_v44  ;;  %v297_v40 = vmul.u32 %v295_v24, %v271_v43  ;;  %v300_v41 = vmul.u32 %v296_v25, %v272_v44 }
  0xac   : > { %v276_v28 = vmul.u32 %v274_v23, %v271_v43  ;;  %v277_v29 = vmul.u32 %v273_v21, %v272_v44  ;;  %v275_v31 = vmul.u32 %v273_v21, %v271_v43  ;;  %v278_v32 = vmul.u32 %v274_v23, %v272_v44 }
  0xad   : > { %v301_v46 = vshll.u32 %v298_v33, 16  ;;  %v302_v48 = vshrl.u32 %v298_v33, 16  ;;  %v303_v51 = vshll.u32 %v299_v34, 16  ;;  %v304_v55 = vshrl.u32 %v299_v34, 16 }
  0xae   : > { %v279_v35 = vshll.u32 %v276_v28, 16  ;;  %v280_v38 = vshrl.u32 %v276_v28, 16  ;;  %v281_v42 = vshll.u32 %v277_v29, 16  ;;  %v282_v45 = vshrl.u32 %v277_v29, 16 }
  0xaf   : > { %vm305_vm7 = vc.u32 %v297_v40, %v301_v46  ;;  %v307_v57 = vadd.s32 %v301_v46, %v297_v40  ;;  %v875_v61 = vsub.s32 32, %v391_v52  ;;  %v394_v4 = vshll.u32 %v754_v47, %v391_v52 }
  0xb0   : > { %vm283_vm6 = vc.u32 %v275_v31, %v279_v35  ;;  %v285_v50 = vadd.s32 %v279_v35, %v275_v31  ;;  %v306_v60 = vsel %vm305_vm7, 1, %v752_v1  ;;  %v397_v7 = vshll.u32 %v755_v49, %v391_v52 }
  0xb1   : > { %v284_v54 = vsel %vm283_vm6, 1, %v752_v1  ;;  %v308_v44 = vadd.s32 %v306_v60, %v300_v41  ;;  %vm309_vm9 = vc.u32 %v307_v57, %v303_v51  ;;  %v881_v3 = vadd.s32 %v307_v57, %v303_v51 }
  0xb2   : > { %v286_v58 = vadd.s32 %v284_v54, %v278_v32  ;;  %vm287_vm8 = vc.u32 %v285_v50, %v281_v42  ;;  %v310_v2 = vsel %vm309_vm9, 1, %v752_v1  ;;  %v395_v6 = vshrl.u32 %v755_v49, %v875_v61 }
  0xb3   : > { %v288_v43 = vsel %vm287_vm8, 1, %v752_v1  ;;  %v312_v5 = vadd.s32 %v310_v2, %v308_v44  ;;  %v398_v8 = vshrl.u32 %v756_v53, %v875_v61  ;;  %v400_v10 = vshll.u32 %v756_v53, %v391_v52 }
  0xb4   : > { %v290_v0 = vadd.s32 %v288_v43, %v286_v58  ;;  %v401_v11 = vshrl.u32 %v757_v56, %v875_v61  ;;  %v403_v12 = vshll.u32 %v757_v56, %v391_v52  ;;  %v893_v14 = vor.u32 %v395_v6, %v394_v4 }
  0xb5   : > { %v313_v13 = vadd.s32 %v312_v5, %v302_v48  ;;  %v895_v15 = vor.u32 %v398_v8, %v397_v7  ;;  %v404_v16 = vshrl.u32 %v758_v59, %v875_v61  ;;  %v406_v18 = vshll.u32 %v758_v59, %v391_v52 }
  0xb6   : > { %v291_v9 = vadd.s32 %v290_v0, %v280_v38  ;;  %v402_v17 = vor.u32 %v401_v11, %v400_v10  ;;  %v407_v53 = vshrl.u32 %v759_v62, %v875_v61  ;;  %vm409_vm11 = vcmp.lt.s32.totalorder %v878_v63, 1 }
  0xb7   : > { %v314_v19 = vadd.s32 %v313_v13, %v304_v55  ;;  %v405_v21 = vor.u32 %v404_v16, %v403_v12  ;;  %v907_v23 = vshll.u32 %v385_v26, 8  ;;  %v315_v24 = vmul.u32 %v849_v37, %v871_v27 }
  0xb8   : > { %v899_v49 = vadd.s32 %v291_v9, %v282_v45  ;;  %v408_v56 = vor.u32 %v407_v53, %v406_v18  ;;  %vm412_vm12 = vcmp.lt.s32.totalorder %v878_v63, 4  ;;  %v417_v59 = vsel %vm409_vm11, %v893_v14, %v895_v15 }
  0xb9   : > { %v318_v25 = vadd.s32 1, %v314_v19  ;;  %vm411_vm13 = vcmp.lt.s32.totalorder %v878_v63, 3  ;;  %v418_v62 = vsel %vm412_vm12, %v405_v21, 920167782  ;;  %v421_v26 = vsel %vm409_vm11, %v895_v15, %v402_v17 }
  0xba   : > { %vm317_vm10 = vc.u32 %v899_v49, %v881_v3  ;;  %v422_v37 = vsel %vm412_vm12, %v408_v56, 1326507024  ;;  %vm410_vm14 = vcmp.lt.s32.totalorder %v878_v63, 2  ;;  %v419_v28 = vsel %vm411_vm13, %v402_v17, %v418_v62 }
  0xbb   : > { %v319_v27 = vsel %vm317_vm10, %v318_v25, %v314_v19  ;;  %v423_v29 = vsel %vm411_vm13, %v405_v21, %v422_v37  ;;  %v420_v31 = vsel %vm410_vm14, %v417_v59, %v419_v28  ;;  %v426_v33 = vand.u32 65535, %v907_v23 }
  0xbc   : > { %v320_v30 = vadd.s32 %v319_v27, %v315_v24  ;;  %v424_v32 = vsel %vm410_vm14, %v421_v26, %v423_v29  ;;  %v427_v34 = vshrl.u32 %v907_v23, 16  ;;  %v451_v40 = vshrl.u32 %v420_v31, 16 }
  0xbd   : > { %v428_v35 = vand.u32 65535, %v424_v32  ;;  %v429_v38 = vshrl.u32 %v424_v32, 16  ;;  %v450_v42 = vand.u32 65535, %v420_v31  ;;  %v414_v53 = vsel %vm412_vm12, %v402_v17, 2102212464 }
  0xbe   : > { %v321_v41 = vadd.s32 536870912, %v320_v30  ;;  %v453_v50 = vmul.u32 %v451_v40, %v426_v33  ;;  %v455_v6 = vmul.u32 %v451_v40, %v427_v34  ;;  %v393_v21 = vshrl.u32 %v754_v47, %v875_v61 }
  0xbf   : > { %v431_v45 = vmul.u32 %v429_v38, %v426_v33  ;;  %v432_v46 = vmul.u32 %v428_v35, %v427_v34  ;;  %v430_v51 = vmul.u32 %v428_v35, %v426_v33  ;;  %v433_v55 = vmul.u32 %v429_v38, %v427_v34 }
  0xc0   : > { %v935_v48 = vshrl.u32 %v321_v41, 30  ;;  %v452_v57 = vmul.u32 %v450_v42, %v426_v33  ;;  %v456_v58 = vshll.u32 %v453_v50, 16  ;;  %v454_v44 = vmul.u32 %v450_v42, %v427_v34 }
  0xc1   : > { %v434_v52 = vshll.u32 %v431_v45, 16  ;;  %v436_v60 = vshll.u32 %v432_v46, 16  ;;  %v435_v2 = vshrl.u32 %v431_v45, 16  ;;  %v437_v56 = vshrl.u32 %v432_v46, 16 }
  0xc2   : > { %v323_v54 = vshll.u32 %v935_v48, 30  ;;  %vm460_vm1 = vc.u32 %v452_v57, %v456_v58  ;;  %v458_v11 = vshll.u32 %v454_v44, 16  ;;  %v462_v12 = vadd.s32 %v456_v58, %v452_v57 }
  0xc3   : > { %vm438_vm15 = vc.u32 %v430_v51, %v434_v52  ;;  %v440_v43 = vadd.s32 %v434_v52, %v430_v51  ;;  %v461_v9 = vsel %vm460_vm1, 1, %v752_v1  ;;  %v457_v59 = vshrl.u32 %v453_v50, 16 }
  0xc4   : > { %v324_v0 = vsub.s32 %v320_v30, %v323_v54  ;;  %v439_v4 = vsel %vm438_vm15, 1, %v752_v1  ;;  %v463_v13 = vadd.s32 %v461_v9, %v455_v6  ;;  %vm464_vm3 = vc.u32 %v462_v12, %v458_v11 }
  0xc5   : > { %v441_v5 = vadd.s32 %v439_v4, %v433_v55  ;;  %vm442_vm0 = vc.u32 %v440_v43, %v436_v60  ;;  %v465_v24 = vsel %vm464_vm3, 1, %v752_v1  ;;  %v413_v26 = vsel %vm409_vm11, %v393_v21, %v893_v14 }
  0xc6   : > { %vm325_vm2 = vcmp.lt.s32.totalorder %v324_v0, 0  ;;  %v326_v7 = vsub.s32 0, %v324_v0  ;;  %v443_v8 = vsel %vm442_vm0, 1, %v752_v1  ;;  %v467_v62 = vadd.s32 %v465_v24, %v463_v13 }
  0xc7   : > { %v445_v10 = vadd.s32 %v443_v8, %v441_v5  ;;  %v415_v37 = vsel %vm411_vm13, %v895_v15, %v414_v53  ;;  %v459_v27 = vshrl.u32 %v454_v44, 16  ;;  %v316_v47 = vadd.s32 %v881_v3, %v899_v49 }
  0xc8   : > { %v327_v16 = vsel %vm325_vm2, %v326_v7, %v324_v0  ;;  %v468_v28 = vadd.s32 %v467_v62, %v457_v59  ;;  %v466_v1 = vadd.s32 %v462_v12, %v458_v11  ;;  %v416_v31 = vsel %vm410_vm14, %v413_v26, %v415_v37 }
  0xc9   : > { %v328_v18 = vclz %v327_v16  ;;  %v446_v19 = vadd.s32 %v445_v10, %v435_v2  ;;  %v470_v35 = vmul.u32 %v907_v23, %v416_v31  ;;  %vm224_vm6 = vcmp.lt.s32.totalorder %v841_v20, 0 }
  0xca   : > { %v469_v32 = vadd.s32 %v468_v28, %v459_v27  ;;  %vm963_vm7 = vcmp.le.f32.partialorder %v222_v22, 0.7853982  ;;  %v346_v57 = vsub.s32 4, %v935_v48  ;;  %vm532_vm13 = vcmask 523264  }
  0xcb   : > { %v621_v25 = vadd.s32 4294967294, %v328_v18  ;;  %v447_v17 = vadd.s32 %v446_v19, %v437_v56  ;;  %vm365_vm14 = vweird.f32 %v841_v20  ;;  %vm379_vm15 = vcmp.lt.s32.totalorder %v847_v36, 0 }
  0xcc   : > { %v473_v15 = vadd.s32 1, %v469_v32  ;;  %v347_v5 = vsel %vm224_vm6, %v346_v57, %v935_v48  ;;  %vm378_vm0 = vcmp.le.f32.partialorder %v377_v39, 0.7853982 }
  0xcd   : > { %vm622_vm4 = vcmp.lt.s32.totalorder %v621_v25, 0  ;;  %vm472_vm5 = vc.u32 %v447_v17, %v466_v1  ;;  %v349_v8 = vsel %vm963_vm7, 0, %v347_v5  ;;  %v471_v13 = vadd.s32 %v466_v1, %v447_v17 }
  0xce   : > { %v331_v61 = vsel %vm622_vm4, 0, %v621_v25  ;;  %v474_v41 = vsel %vm472_vm5, %v473_v15, %v469_v32  ;;  %v366_v19 = vadd.s32 3, %v349_v8  ;;  %vm520_vm4 = vweird.f32 %v847_v36 }
  0xcf   : > { %v332_v29 = vsub.s32 32, %v331_v61  ;;  %v336_v30 = vsub.s32 4294967266, %v331_v61  ;;  %v333_v14 = vshll.u32 %v324_v0, %v331_v61  ;;  %v475_v42 = vadd.s32 %v474_v41, %v470_v35 }
  0xd0   : > { %v367_v27 = vand.u32 3, %v366_v19 }
  0xd1   : > { %v334_v33 = vshrl.u32 %v316_v47, %v332_v29  ;;  %v337_v34 = vadd.s32 127, %v336_v30  ;;  %v476_v49 = vadd.s32 536870912, %v475_v42 }
  0xd2   : > { %vm368_vm10 = vcmp.lt.s32.totalorder %v367_v27, 2  ;;  %vm369_vm11 = vcmp.eq.s32.totalorder %v367_v27, 0  ;;  %vm372_vm12 = vcmp.eq.s32.totalorder %v367_v27, 2 }
  0xd3   : > { %v335_v38 = vor.u32 %v334_v33, %v333_v14  ;;  %v338_v40 = vshll.u32 %v337_v34, 23  ;;  %v957_v50 = vshrl.u32 %v476_v49, 30 }
  0xd5   : > { %v339_v3 = vor.u32 4788187, %v338_v40  ;;  %v342_v46 = vcvt.s32.f32 %v335_v38  ;;  %v478_v51 = vshll.u32 %v957_v50, 30  ;;  %v501_v35 = vsub.s32 4, %v957_v50 }
  0xd7   : > { %v340_v45 = vand.u32 2147483647, %v339_v3  ;;  %v479_v54 = vsub.s32 %v475_v42, %v478_v51  ;;  %v502_v42 = vsel %vm379_vm15, %v501_v35, %v957_v50 }
  0xd9   : > { %v343_v63 = vmul.f32 %v342_v46, %v340_v45  ;;  %vm480_vm8 = vcmp.lt.s32.totalorder %v479_v54, 0  ;;  %v481_v60 = vsub.s32 0, %v479_v54  ;;  %v504_v45 = vsel %vm378_vm0, 0, %v502_v42 }
  0xda   : > { %v521_v39 = vadd.s32 3, %v504_v45 }
  0xdb   : > { %v344_v52 = vxor.u32 2147483648, %v343_v63  ;;  %v482_v44 = vsel %vm480_vm8, %v481_v60, %v479_v54 }
  0xdc   : > { %v483_v2 = vclz %v482_v44 }
  0xdd   : > { %v345_v55 = vsel %vm224_vm6, %v344_v52, %v343_v63 }
  0xde   : > { %v348_v58 = vsel %vm963_vm7, %v841_v20, %v345_v55  ;;  %v624_v6 = vadd.s32 4294967294, %v483_v2 }
  0xdf   : > { %v350_v43 = vmul.f32 %v348_v58, %v348_v58 }
  0xe0   : > { %vm625_vm9 = vcmp.lt.s32.totalorder %v624_v6, 0 }
  0xe1   : > { %v358_v0 = vmul.f32 -0.00019511016, %v350_v43  ;;  %v351_v4 = vmul.f32 -0.001358992, %v350_v43  ;;  %v486_v11 = vsel %vm625_vm9, 0, %v624_v6 }
  0xe2   : > { %v487_v16 = vsub.s32 32, %v486_v11  ;;  %v491_v18 = vsub.s32 4294967266, %v486_v11  ;;  %v488_v48 = vshll.u32 %v479_v54, %v486_v11 }
  0xe3   : > { %v359_v22 = vadd.f32 0.008332121, %v358_v0  ;;  %v352_v7 = vadd.f32 0.041655596, %v351_v4 }
  0xe4   : > { %v489_v56 = vshrl.u32 %v471_v13, %v487_v16  ;;  %v492_v24 = vadd.s32 127, %v491_v18 }
  0xe5   : > { %v360_v9 = vmul.f32 %v359_v22, %v350_v43  ;;  %v353_v10 = vmul.f32 %v352_v7, %v350_v43 }
  0xe6   : > { %v490_v62 = vor.u32 %v489_v56, %v488_v48  ;;  %v493_v26 = vshll.u32 %v492_v24, 23 }
  0xe7   : > { %v361_v12 = vadd.f32 -0.16666654, %v360_v9  ;;  %v354_v53 = vadd.f32 -0.4999988, %v353_v10 }
  0xe8   : > { %v494_v47 = vor.u32 4788187, %v493_v26  ;;  %v497_v1 = vcvt.s32.f32 %v490_v62 }
  0xe9   : > { %v362_v21 = vmul.f32 %v361_v12, %v350_v43  ;;  %v355_v25 = vmul.f32 %v354_v53, %v350_v43 }
  0xea   : > { %v495_v61 = vand.u32 2147483647, %v494_v47 }
  0xeb   : > { %v363_v59 = vadd.f32 1.0, %v362_v21  ;;  %v356_v37 = vadd.f32 1.0, %v355_v25 }
  0xec   : > { %v498_v30 = vmul.f32 %v497_v1, %v495_v61 }
  0xed   : > { %v364_v28 = vmul.f32 %v363_v59, %v348_v58  ;;  %v373_v17 = vxor.u32 2147483648, %v356_v37  ;;  %v522_v58 = vand.u32 3, %v521_v39 }
  0xee   : > { %v499_v33 = vxor.u32 2147483648, %v498_v30 }
  0xef   : > { %v370_v29 = vxor.u32 2147483648, %v364_v28  ;;  %v374_v32 = vsel %vm372_vm12, %v373_v17, %v364_v28  ;;  %vm524_vm1 = vcmp.eq.s32.totalorder %v522_v58, 0  ;;  %vm527_vm2 = vcmp.eq.s32.totalorder %v522_v58, 2 }
  0xf0   : > { %v500_v15 = vsel %vm379_vm15, %v499_v33, %v498_v30  ;;  %vm523_vm3 = vcmp.lt.s32.totalorder %v522_v58, 2 }
  0xf1   : > { %v371_v31 = vsel %vm369_vm11, %v356_v37, %v370_v29  ;;  %v503_v38 = vsel %vm378_vm0, %v847_v36, %v500_v15 }
  0xf2   : > { %v375_v14 = vsel %vm368_vm10, %v371_v31, %v374_v32  ;;  %v505_v20 = vmul.f32 %v503_v38, %v503_v38 }
  0xf3   : > { %v376_v34 = vsel %vm365_vm14, nan, %v375_v14 }
  0xf4   : > { %533 = vst.msk [vmem:[%s979_s8] sm:$0xff] %vm532_vm13, %v376_v34  ;;  %v513_v40 = vmul.f32 -0.00019511016, %v505_v20  ;;  %v506_v41 = vmul.f32 -0.001358992, %v505_v20 }
  0xf6   : > { %v514_v3 = vadd.f32 0.008332121, %v513_v40  ;;  %v507_v49 = vadd.f32 0.041655596, %v506_v41 }
  0xf8   : > { %v515_v46 = vmul.f32 %v514_v3, %v505_v20  ;;  %v508_v63 = vmul.f32 %v507_v49, %v505_v20 }
  0xfa   : > { %v516_v51 = vadd.f32 -0.16666654, %v515_v46  ;;  %v509_v52 = vadd.f32 -0.4999988, %v508_v63 }
  0xfc   : > { %v517_v54 = vmul.f32 %v516_v51, %v505_v20  ;;  %v510_v23 = vmul.f32 %v509_v52, %v505_v20 }
  0xfe   : > { %v518_v55 = vadd.f32 1.0, %v517_v54  ;;  %v511_v57 = vadd.f32 1.0, %v510_v23 }
 0x100   : > { %v519_v50 = vmul.f32 %v518_v55, %v503_v38  ;;  %v528_v60 = vxor.u32 2147483648, %v511_v57 }
 0x102   : > { %v525_v43 = vxor.u32 2147483648, %v519_v50  ;;  %v529_v0 = vsel %vm527_vm2, %v528_v60, %v519_v50 }
 0x104   : > { %v526_v44 = vsel %vm524_vm1, %v511_v57, %v525_v43 }
 0x105   : > { %v530_v2 = vsel %vm523_vm3, %v526_v44, %v529_v0 }
 0x106   : > { %v531_v4 = vsel %vm520_vm4, nan, %v530_v2 }
 0x107   : > { %534 = vst.msk [vmem:[%s979_s8 + $0x8] sm:$0xff] %vm532_vm13, %v531_v4 }
 0x108   : > { %714 = shalt.err (!%p711_p3)
}
 0x109   : > { %s760_s4 = smov 128   ;;  %s761_s5 = smov 8  }
 0x10a   : > { %632 = dma.vmem_to_hbm [thread:$0]  (%p820_p5), %s549_s19, 256, %s551_s20, %s536_s16, %s760_s4, %s760_s4, %s761_s5  }
 0x10b PF: > { %p638_p4 = scmp.ge.s32.totalorder %s749_s15, 2  ;;  %s565_s6 = sand.u32 1, %s737_s12  }
 0x10c   : > { %s566_s7 = scalar_lea.sflag [#allocation3], %s565_s6 }
 0x10d   : > { %p635_p7 = pnand %p638_p4, %p824_p6 }
 0x10f   : > { %p636_p8 = pneg %p635_p7 }
 0x111   : > { %732 = dma.done.wait (%p636_p8), %s566_s7, 256  }
 0x112   : > { %734 = vsyncadd (%p636_p8), %s566_s7, 4294967040  ;;  %p13_p9 = scmp.ge.s32.totalorder %s807_s18, 4   ;;  %s1033_s12 = smov %s741_s13 }
 0x113   : > { %s1034_s13 = smov %s745_s14  ;;  %s1035_s14 = smov %s818_s21 }
 0x114   : > { %s1036_s15 = smov %s807_s18  ;;  %15 = sbr.rel (!%p13_p9) target bundleno = 3 (0x3), region = 67 }
 0x119   :  { %572 = vsyncpa [#allocation3], 1 }
 0x11a   :  { %574 = vsyncpa [#allocation3 + $0x1], 1 }

</bundles_post_ra>
